<compile_context>
chip_gen: v7x
topology: tpu7x:2x2x1
jax: 0.10.0
libtpu: 0.0.40
codegen_flags: <defaults>
</compile_context>

<pallas_src>
import jax
import jax.numpy as jnp
from jax.experimental import pallas as pl
from jax.experimental.pallas import tpu as pltpu

LANE = 128
SUBLANE = 8


def _round_up(x, m):
    return (x + m - 1) // m * m


def rnarna_inter_kernel(x1_ref, x2_ref, xf_ref, w1_ref, w2_ref, w3_ref,
                        b_ref, out_ref):
    # In-kernel "concat": sum of three partial GEMMs over the folded,
    # lane-padded weight blocks. bf16 MXU inputs, f32 accumulation.
    cdt = w1_ref.dtype
    acc = jnp.dot(x1_ref[...].astype(cdt), w1_ref[...],
                  preferred_element_type=jnp.float32)
    acc += jnp.dot(x2_ref[...].astype(cdt), w2_ref[...],
                   preferred_element_type=jnp.float32)
    acc += jnp.dot(xf_ref[...].astype(cdt), w3_ref[...],
                   preferred_element_type=jnp.float32)
    # Lane-dense (Lp multiple of 128) full-width f32 store.
    out_ref[...] = acc + b_ref[...]


def prepare_params(params, h1, h2, *, compute_dtype=jnp.bfloat16):
    """One-time parameter folding / packing (cache the result; do NOT redo per step).

    Folds feature_embedding into the classifier and splits the classifier into
    three lane-padded (K_i, Lp) weight blocks (one per activation source) plus
    one (1, Lp) f32 bias row.
    """
    Wf, bf, Wc, bc = params["Wf"], params["bf"], params["Wc"], params["bc"]
    feat_out, feat_in = Wf.shape          # (100, 25)
    num_labels = Wc.shape[0]

    Wc_t = Wc.T.astype(jnp.float32)       # (H1+H2+100, L)
    Wc1 = Wc_t[:h1]                       # (H1, L)
    Wc2 = Wc_t[h1:h1 + h2]                # (H2, L)
    Wc3 = Wc_t[h1 + h2:]                  # (100, L)

    # Fold the feature-embedding Linear into the classifier.
    Wf_c3 = Wf.T.astype(jnp.float32) @ Wc3                           # (25, L)
    b_comb = bc.astype(jnp.float32) + bf.astype(jnp.float32) @ Wc3   # (L,)

    Lp = _round_up(max(num_labels, LANE), LANE)

    def pad_L(w):
        out = jnp.zeros((w.shape[0], Lp), jnp.float32)
        return out.at[:, :num_labels].set(w)

    b_row = jnp.zeros((1, Lp), jnp.float32).at[0, :num_labels].set(b_comb)

    return {
        "W1": pad_L(Wc1).astype(compute_dtype),    # (H1, Lp)
        "W2": pad_L(Wc2).astype(compute_dtype),    # (H2, Lp)
        "W3": pad_L(Wf_c3).astype(compute_dtype),  # (25, Lp) folded feat-emb
        "b": b_row,                                # (1, Lp) f32 folded bias
        "h1": h1, "h2": h2, "feat_in": feat_in,
        "num_labels": num_labels, "Lp": Lp,
        "compute_dtype": compute_dtype,
    }


def rnarna_inter_forward(omics1_out, omics2_out, features, prepped,
                         *, block_b=256):
    """Fused classifier head on the two pooled backbone outputs + raw features."""
    B = omics1_out.shape[0]
    h1 = omics1_out.shape[1]
    h2 = omics2_out.shape[1]
    fi = features.shape[1]
    Lp = prepped["Lp"]
    num_labels = prepped["num_labels"]
    assert (h1, h2, fi) == (prepped["h1"], prepped["h2"], prepped["feat_in"])

    # Batch tiling only; the feature (K) axes are left untouched and read
    # directly by the kernel (full-extent last dims satisfy the BlockSpec rule).
    tb = min(block_b, _round_up(B, SUBLANE))
    Bp = _round_up(B, tb)
    if Bp != B:
        pad = ((0, Bp - B), (0, 0))
        omics1_out = jnp.pad(omics1_out, pad)
        omics2_out = jnp.pad(omics2_out, pad)
        features = jnp.pad(features, pad)

    logits = pl.pallas_call(
        rnarna_inter_kernel,
        out_shape=jax.ShapeDtypeStruct((Bp, Lp), jnp.float32),
        grid=(Bp // tb,),
        in_specs=[
            pl.BlockSpec((tb, h1), lambda i: (i, 0)),   # o1: pipelined over batch
            pl.BlockSpec((tb, h2), lambda i: (i, 0)),   # o2: pipelined over batch
            pl.BlockSpec((tb, fi), lambda i: (i, 0)),   # features: pipelined
            pl.BlockSpec((h1, Lp), lambda i: (0, 0)),   # W1: VMEM-resident
            pl.BlockSpec((h2, Lp), lambda i: (0, 0)),   # W2: VMEM-resident
            pl.BlockSpec((fi, Lp), lambda i: (0, 0)),   # W3: VMEM-resident
            pl.BlockSpec((1, Lp), lambda i: (0, 0)),    # bias: VMEM-resident
        ],
        out_specs=pl.BlockSpec((tb, Lp), lambda i: (i, 0)),  # lane-dense store
        compiler_params=pltpu.CompilerParams(
            dimension_semantics=("parallel",)),          # shard batch over TCs
    )(omics1_out, omics2_out, features,
      prepped["W1"], prepped["W2"], prepped["W3"], prepped["b"])

    return logits[:B, :num_labels]


def cross_entropy_loss(logits, labels):
    # single_label_classification path (num_labels > 1, integer labels) — glue.
    # TODO(synk): regression (num_labels==1) / multi-label BCE paths not implemented.
    logz = jax.nn.logsumexp(logits, axis=-1)
    picked = jnp.take_along_axis(logits, labels[:, None], axis=-1)[:, 0]
    return jnp.mean(logz - picked)


def init_params(key, h1, h2, num_labels, feat_in=25, feat_out=100):
    k1, k2, k3, k4 = jax.random.split(key, 4)
    scale_f = 1.0 / jnp.sqrt(feat_in)
    scale_c = 1.0 / jnp.sqrt(h1 + h2 + feat_out)
    return {
        "Wf": jax.random.uniform(k1, (feat_out, feat_in), jnp.float32,
                                 -scale_f, scale_f),
        "bf": jax.random.uniform(k2, (feat_out,), jnp.float32,
                                 -scale_f, scale_f),
        "Wc": jax.random.uniform(k3, (num_labels, h1 + h2 + feat_out),
                                 jnp.float32, -scale_c, scale_c),
        "bc": jax.random.uniform(k4, (num_labels,), jnp.float32,
                                 -scale_c, scale_c),
    }


if __name__ == "__main__":
    B, H1, H2, FEAT_IN, NUM_LABELS = 8, 32, 32, 25, 2

    key = jax.random.PRNGKey(0)
    kp, k1, k2, k3, k4 = jax.random.split(key, 5)
    params = init_params(kp, H1, H2, NUM_LABELS, feat_in=FEAT_IN)
    prepped = prepare_params(params, H1, H2)   # one-time weight fold/pack

    # Pooled outputs of the two backbone models and the extra feature vector.
    omics1_out = jax.random.normal(k1, (B, H1), jnp.float32)
    omics2_out = jax.random.normal(k2, (B, H2), jnp.float32)
    features = jax.random.normal(k3, (B, FEAT_IN), jnp.float32)
    labels = jax.random.randint(k4, (B,), 0, NUM_LABELS)

    logits = rnarna_inter_forward(omics1_out, omics2_out, features, prepped)
    logits = jax.block_until_ready(logits)

    # Reference in full f32, exactly the PyTorch concat formulation.
    feat_emb = features @ params["Wf"].T + params["bf"]
    final_input = jnp.concatenate([omics1_out, omics2_out, feat_emb], axis=-1)
    ref_logits = final_input @ params["Wc"].T + params["bc"]
    # bf16 activations/weights on the MXU -> relaxed tolerance vs f32 reference.
    assert jnp.allclose(logits, ref_logits, atol=3e-2, rtol=3e-2), (
        float(jnp.max(jnp.abs(logits - ref_logits))))

    loss = cross_entropy_loss(logits, labels)
    jax.block_until_ready(loss)

    print("KERNEL_OK")
</pallas_src>

<mosaic_0001>
module attributes {stable_mosaic.version = 11 : i64} {
  func.func @rnarna_inter_kernel(%arg0: i32, %arg1: memref<8x32xf32, #tpu.memory_space<vmem>>, %arg2: memref<8x32xf32, #tpu.memory_space<vmem>>, %arg3: memref<8x25xf32, #tpu.memory_space<vmem>>, %arg4: memref<32x128xbf16, #tpu.memory_space<vmem>>, %arg5: memref<32x128xbf16, #tpu.memory_space<vmem>>, %arg6: memref<25x128xbf16, #tpu.memory_space<vmem>>, %arg7: memref<1x128xf32, #tpu.memory_space<vmem>>, %arg8: memref<8x128xf32, #tpu.memory_space<vmem>>) attributes {dimension_semantics = [#tpu.dimension_semantics<parallel>], iteration_bounds = array<i64: 1>, scalar_prefetch = 0 : i64, scratch_operands = 0 : i64, tpu.core_type = #tpu.core_type<tc>, window_params = [{transform_indices = @transform_0, window_bounds = array<i64: 8, 32>}, {transform_indices = @transform_1, window_bounds = array<i64: 8, 32>}, {transform_indices = @transform_2, window_bounds = array<i64: 8, 25>}, {pipeline_mode = #tpu.pipeline_mode<synchronous>, transform_indices = @transform_3, window_bounds = array<i64: 32, 128>}, {pipeline_mode = #tpu.pipeline_mode<synchronous>, transform_indices = @transform_4, window_bounds = array<i64: 32, 128>}, {pipeline_mode = #tpu.pipeline_mode<synchronous>, transform_indices = @transform_5, window_bounds = array<i64: 25, 128>}, {pipeline_mode = #tpu.pipeline_mode<synchronous>, transform_indices = @transform_6, window_bounds = array<i64: 1, 128>}, {transform_indices = @transform_7, window_bounds = array<i64: 8, 128>}]} {
    %c0 = arith.constant 0 : index
    %c0_0 = arith.constant 0 : index
    %0 = vector.load %arg1[%c0, %c0_0] : memref<8x32xf32, #tpu.memory_space<vmem>>, vector<8x32xf32>
    %1 = arith.truncf %0 : vector<8x32xf32> to vector<8x32xbf16>
    %c0_1 = arith.constant 0 : index
    %c0_2 = arith.constant 0 : index
    %2 = vector.load %arg4[%c0_1, %c0_2] : memref<32x128xbf16, #tpu.memory_space<vmem>>, vector<32x128xbf16>
    %cst = arith.constant dense<0.000000e+00> : vector<8x128xf32>
    %3 = tpu.matmul %1, %2, %cst {dimension_numbers = #tpu.dot_dimension_numbers<[1], [0], [0], [1], [0, 0, 1, 1], [], []>} : vector<8x32xbf16>, vector<32x128xbf16>, vector<8x128xf32> -> vector<8x128xf32>
    %c0_3 = arith.constant 0 : index
    %c0_4 = arith.constant 0 : index
    %4 = vector.load %arg2[%c0_3, %c0_4] : memref<8x32xf32, #tpu.memory_space<vmem>>, vector<8x32xf32>
    %5 = arith.truncf %4 : vector<8x32xf32> to vector<8x32xbf16>
    %c0_5 = arith.constant 0 : index
    %c0_6 = arith.constant 0 : index
    %6 = vector.load %arg5[%c0_5, %c0_6] : memref<32x128xbf16, #tpu.memory_space<vmem>>, vector<32x128xbf16>
    %cst_7 = arith.constant dense<0.000000e+00> : vector<8x128xf32>
    %7 = tpu.matmul %5, %6, %cst_7 {dimension_numbers = #tpu.dot_dimension_numbers<[1], [0], [0], [1], [0, 0, 1, 1], [], []>} : vector<8x32xbf16>, vector<32x128xbf16>, vector<8x128xf32> -> vector<8x128xf32>
    %8 = arith.addf %3, %7 : vector<8x128xf32>
    %c0_8 = arith.constant 0 : index
    %c0_9 = arith.constant 0 : index
    %9 = vector.load %arg3[%c0_8, %c0_9] : memref<8x25xf32, #tpu.memory_space<vmem>>, vector<8x25xf32>
    %10 = arith.truncf %9 : vector<8x25xf32> to vector<8x25xbf16>
    %c0_10 = arith.constant 0 : index
    %c0_11 = arith.constant 0 : index
    %11 = vector.load %arg6[%c0_10, %c0_11] : memref<25x128xbf16, #tpu.memory_space<vmem>>, vector<25x128xbf16>
    %cst_12 = arith.constant dense<0.000000e+00> : vector<8x128xf32>
    %12 = tpu.matmul %10, %11, %cst_12 {dimension_numbers = #tpu.dot_dimension_numbers<[1], [0], [0], [1], [0, 0, 1, 1], [], []>} : vector<8x25xbf16>, vector<25x128xbf16>, vector<8x128xf32> -> vector<8x128xf32>
    %13 = arith.addf %8, %12 : vector<8x128xf32>
    %c0_13 = arith.constant 0 : index
    %c0_14 = arith.constant 0 : index
    %14 = vector.load %arg7[%c0_13, %c0_14] : memref<1x128xf32, #tpu.memory_space<vmem>>, vector<1x128xf32>
    %15 = vector.broadcast %14 : vector<1x128xf32> to vector<8x128xf32>
    %16 = arith.addf %13, %15 : vector<8x128xf32>
    %c0_15 = arith.constant 0 : index
    %c0_16 = arith.constant 0 : index
    %17 = vector.load %arg8[%c0_15, %c0_16] : memref<8x128xf32, #tpu.memory_space<vmem>>, vector<8x128xf32>
    tpu.vector_store %arg8[%c0_15, %c0_16], %16 {strides = array<i32>} : memref<8x128xf32, #tpu.memory_space<vmem>>, vector<8x128xf32>,
    return
  }
  func.func @transform_0(%arg0: i32) -> (i32, i32) {
    %c0_i32 = arith.constant 0 : i32
    %c0_i32_0 = arith.constant 0 : i32
    return %arg0, %c0_i32 : i32, i32
  }
  func.func @transform_1(%arg0: i32) -> (i32, i32) {
    %c0_i32 = arith.constant 0 : i32
    %c0_i32_0 = arith.constant 0 : i32
    return %arg0, %c0_i32 : i32, i32
  }
  func.func @transform_2(%arg0: i32) -> (i32, i32) {
    %c0_i32 = arith.constant 0 : i32
    %c0_i32_0 = arith.constant 0 : i32
    return %arg0, %c0_i32 : i32, i32
  }
  func.func @transform_3(%arg0: i32) -> (i32, i32) {
    %c0_i32 = arith.constant 0 : i32
    %c0_i32_0 = arith.constant 0 : i32
    %c0_i32_1 = arith.constant 0 : i32
    return %c0_i32, %c0_i32_0 : i32, i32
  }
  func.func @transform_4(%arg0: i32) -> (i32, i32) {
    %c0_i32 = arith.constant 0 : i32
    %c0_i32_0 = arith.constant 0 : i32
    %c0_i32_1 = arith.constant 0 : i32
    return %c0_i32, %c0_i32_0 : i32, i32
  }
  func.func @transform_5(%arg0: i32) -> (i32, i32) {
    %c0_i32 = arith.constant 0 : i32
    %c0_i32_0 = arith.constant 0 : i32
    %c0_i32_1 = arith.constant 0 : i32
    return %c0_i32, %c0_i32_0 : i32, i32
  }
  func.func @transform_6(%arg0: i32) -> (i32, i32) {
    %c0_i32 = arith.constant 0 : i32
    %c0_i32_0 = arith.constant 0 : i32
    %c0_i32_1 = arith.constant 0 : i32
    return %c0_i32, %c0_i32_0 : i32, i32
  }
  func.func @transform_7(%arg0: i32) -> (i32, i32) {
    %c0_i32 = arith.constant 0 : i32
    %c0_i32_0 = arith.constant 0 : i32
    return %arg0, %c0_i32 : i32, i32
  }
}

</mosaic_0001>

<bundles_post_ra>
// kernel: tpu_custom_call.1
= control target key start
LH: loop header
LB: loop body
LE: loop exit
PB: predicated region body
PF: predicated region fallthrough
CT: control target
= control target key end

     0   :  { %12 = vsyncpa [#allocation3], 0  ;;  %s656_s0 = inlined_call_operand.hbm [shape: f32[8,32], index: 0, kind: input, shape index: {}]   ;;  %s657_s1 = inlined_call_operand.hbm [shape: f32[8,32], index: 1, kind: input, shape index: {}]   ;;  %s658_s2 = inlined_call_operand.hbm [shape: f32[8,25], index: 2, kind: input, shape index: {}]   ;;  %s659_s3 = inlined_call_operand.hbm [shape: bf16[32,128], index: 3, kind: input, shape index: {}]   ;;  %s660_s4 = inlined_call_operand.hbm [shape: bf16[32,128], index: 4, kind: input, shape index: {}]   ;;  %s661_s5 = inlined_call_operand.vmem [shape: bf16[25,128], index: 5, kind: input, shape index: {}]   ;;  %s662_s6 = inlined_call_operand.vmem [shape: f32[1,128], index: 6, kind: input, shape index: {}]   ;;  %s663_s7 = inlined_call_operand.hbm [shape: f32[8,128], index: 7, kind: output, shape index: {}]  }
   0x1   :  { %13 = vsyncpa [#allocation6], 0 }
   0x2   :  { %14 = vsyncpa [#allocation9], 0 }
   0x3   :  { %15 = vsyncpa [#allocation4], 0  ;;  %s508_s24 = smov [#allocation5]   ;;  %s509_s26 = smov [#allocation8]  }
   0x4   :  { %s32_s25 = sshll.u32 %s508_s24, 4  ;;  %s51_s27 = sshll.u32 %s509_s26, 4  ;;  %s33_s25 = int_to_ptr.vmem [resolvable:$true] %s32_s25  ;;  %s559_s27 = int_to_ptr.vmem [resolvable:$true] %s51_s27 }
   0x5   :  { %s368_s30 = scalar_lea.hbm %s657_s1, 128 }
   0x6   :  { %p369_p0 = scmp.ne.s32.totalorder %s657_s1, %s368_s30  ;;  %p372_p1 = scmp.lt.u32.totalorder %s368_s30, %s657_s1 }
   0x8   :  { %p374_p2 = pnand %p372_p1, %p369_p0 }
   0xa   :  { %377 = shalt.err (!%p374_p2)
}
   0xb   :  { %s378_s12 = scalar_lea.vmem %s33_s25, 128  ;;  %p383_p4 = scmp.lt.s32.totalorder %s33_s25, %s33_s25 }
   0xc   :  { %p379_p3 = scmp.ne.s32.totalorder %s33_s25, %s378_s12  ;;  %p384_p5 = scmp.lt.s32.totalorder %s378_s12, %s378_s12 }
   0xe   :  { %p385_p6 = por %p384_p5, %p383_p4 }
  0x10   :  { %p386_p7 = pnand %p385_p6, %p379_p3 }
  0x12   :  { %389 = shalt.err (!%p386_p7)
}
  0x13   :  { %35 = dma.hbm_to_vmem [thread:$0]  %s657_s1, 128, %s33_s25, [#allocation6]  }
  0x14   :  { %s390_s17 = scalar_lea.hbm %s659_s3, 256 }
  0x15   :  { %p391_p8 = scmp.ne.s32.totalorder %s659_s3, %s390_s17  ;;  %p394_p9 = scmp.lt.u32.totalorder %s390_s17, %s659_s3 }
  0x17   :  { %p396_p10 = pnand %p394_p9, %p391_p8 }
  0x19   :  { %399 = shalt.err (!%p396_p10)
}
  0x1a   :  { %s400_s22 = scalar_lea.vmem %s559_s27, 256  ;;  %p405_p12 = scmp.lt.s32.totalorder %s559_s27, %s559_s27 }
  0x1b   :  { %p401_p11 = scmp.ne.s32.totalorder %s559_s27, %s400_s22  ;;  %p406_p13 = scmp.lt.s32.totalorder %s400_s22, %s400_s22 }
  0x1d   :  { %p407_p0 = por %p406_p13, %p405_p12 }
  0x1f   :  { %p408_p1 = pnand %p407_p0, %p401_p11 }
  0x21   :  { %411 = shalt.err (!%p408_p1)
}
  0x22   :  { %s510_s1 = smov 64   ;;  %s511_s23 = smov 4  }
  0x23   :  { %57 = dma.hbm_to_vmem [thread:$0]  %s659_s3, 256, %s559_s27, [#allocation9], %s510_s1, %s510_s1, %s511_s23  }
  0x24   :  { %s512_s26 = smov [#allocation2]   ;;  %s513_s29 = smov [#allocation7]  }
  0x25   :  { %s22_s28 = sshll.u32 %s512_s26, 4  ;;  %s42_s30 = sshll.u32 %s513_s29, 4  ;;  %s23_s28 = int_to_ptr.vmem [resolvable:$true] %s22_s28  ;;  %s43_s30 = int_to_ptr.vmem [resolvable:$true] %s42_s30 }
  0x26   :  { %s412_s10 = scalar_lea.hbm %s656_s0, 128 }
  0x27   :  { %p413_p2 = scmp.ne.s32.totalorder %s656_s0, %s412_s10  ;;  %p416_p3 = scmp.lt.u32.totalorder %s412_s10, %s656_s0 }
  0x29   :  { %p418_p4 = pnand %p416_p3, %p413_p2 }
  0x2b   :  { %421 = shalt.err (!%p418_p4)
}
  0x2c   :  { %s422_s3 = scalar_lea.vmem %s23_s28, 128  ;;  %p427_p6 = scmp.lt.s32.totalorder %s23_s28, %s23_s28 }
  0x2d   :  { %p423_p5 = scmp.ne.s32.totalorder %s23_s28, %s422_s3  ;;  %p428_p7 = scmp.lt.s32.totalorder %s422_s3, %s422_s3 }
  0x2f   :  { %p429_p8 = por %p428_p7, %p427_p6 }
  0x31   :  { %p430_p9 = pnand %p429_p8, %p423_p5 }
  0x33   :  { %433 = shalt.err (!%p430_p9)
}
  0x34   :  { %25 = dma.hbm_to_vmem [thread:$0]  %s656_s0, 128, %s23_s28, [#allocation3]  }
  0x35   :  { %s434_s18 = scalar_lea.hbm %s658_s2, 128 }
  0x36   :  { %p435_p10 = scmp.ne.s32.totalorder %s658_s2, %s434_s18  ;;  %p438_p11 = scmp.lt.u32.totalorder %s434_s18, %s658_s2 }
  0x38   :  { %p440_p12 = pnand %p438_p11, %p435_p10 }
  0x3a   :  { %443 = shalt.err (!%p440_p12)
}
  0x3b   :  { %s444_s24 = scalar_lea.vmem %s43_s30, 128  ;;  %p449_p0 = scmp.lt.s32.totalorder %s43_s30, %s43_s30 }
  0x3c   :  { %p445_p13 = scmp.ne.s32.totalorder %s43_s30, %s444_s24  ;;  %p450_p1 = scmp.lt.s32.totalorder %s444_s24, %s444_s24 }
  0x3e   :  { %p451_p2 = por %p450_p1, %p449_p0 }
  0x40   :  { %p452_p3 = pnand %p451_p2, %p445_p13 }
  0x42   :  { %455 = shalt.err (!%p452_p3)
}
  0x43   :  { %45 = dma.hbm_to_vmem [thread:$0]  %s658_s2, 128, %s43_s30, [#allocation6]  }
  0x44   :  { %s514_s26 = smov [#allocation10]   ;;  %s456_s9 = scalar_lea.hbm %s660_s4, 256 }
  0x45   :  { %s63_s28 = sshll.u32 %s514_s26, 4  ;;  %p457_p4 = scmp.ne.s32.totalorder %s660_s4, %s456_s9  ;;  %s64_s28 = int_to_ptr.vmem [resolvable:$true] %s63_s28 }
  0x46   :  { %p460_p5 = scmp.lt.u32.totalorder %s456_s9, %s660_s4 }
  0x48   :  { %p462_p6 = pnand %p460_p5, %p457_p4 }
  0x4a   :  { %465 = shalt.err (!%p462_p6)
}
  0x4b   :  { %s466_s14 = scalar_lea.vmem %s64_s28, 256  ;;  %p471_p8 = scmp.lt.s32.totalorder %s64_s28, %s64_s28 }
  0x4c   :  { %p467_p7 = scmp.ne.s32.totalorder %s64_s28, %s466_s14  ;;  %p472_p9 = scmp.lt.s32.totalorder %s466_s14, %s466_s14 }
  0x4e   :  { %p473_p10 = por %p472_p9, %p471_p8 }
  0x50   :  { %p474_p11 = pnand %p473_p10, %p467_p7 }
  0x52   :  { %477 = shalt.err (!%p474_p11)
}
  0x53   :  { %69 = dma.hbm_to_vmem [thread:$0]  %s660_s4, 256, %s64_s28, [#allocation9], %s510_s1, %s510_s1, %s511_s23  }
  0x54   :  { %500 = dma.done.wait [#allocation3], 128  }
  0x55   :  { %501 = vsyncadd [#allocation3], 4294967168 }
  0x56   :  { %502 = dma.done.wait [#allocation6], 256  }
  0x57   :  { %503 = vsyncadd [#allocation6], 4294967040 }
  0x58   :  { %504 = dma.done.wait [#allocation9], 512  }
  0x59   :  { %505 = vsyncadd [#allocation9], 4294966784  ;;  %v515_v0 = vmov 0.0   ;;  %vm516_vm0 = vmmov 0   ;;  %v362_v1 = vld [vmem:[#allocation10] sm:$0xff]   ;;  %vm234_vm1 = vcmask 1043456  }
  0x5a   :  { %327 = vmatprep.subr.bf16.mxu0 %v515_v0  ;;  %335 = vmatprep.subr.bf16.mxu1 %v515_v0  ;;  %v363_v2 = vld [vmem:[#allocation8] sm:$0xff]   ;;  %v364_v3 = vld [vmem:[#allocation10 + $0x8] sm:$0xff]   ;;  %v365_v4 = vld [vmem:[#allocation8 + $0x8] sm:$0xff]   ;;  %vm235_vm2 = vcmask 1044480   ;;  %v517_v7 = vmov 65535   ;;  %vm114_vm3 = vcmask 261120  }
  0x5b   :  { %331 = vmatprep.mubr.msk.bf16.mxu0 %vm516_vm0, %v515_v0  ;;  %339 = vmatprep.mubr.msk.bf16.mxu1 %vm516_vm0, %v515_v0  ;;  %v96_v5 = vld [vmem:[#allocation5] sm:$0xff]  ;;  %v90_v6 = vld [vmem:[#allocation2] sm:$0xff]  ;;  %v236_v8 = vsel %vm234_vm1, 4294967295, %v517_v7  ;;  %v366_v11 = vld [vmem:[%s661_s5] sm:$0xff]   ;;  %vm230_vm4 = vcmask 203776   ;;  %s518_s15 = smov [#allocation11]  }
  0x5c   :  { %328 = vmatpush3.bf16.msra.mxu0 %v362_v1  ;;  %336 = vmatpush3.bf16.msra.mxu1 %v363_v2  ;;  %v97_v9 = vpack.c.bf16 %v96_v5, %v96_v5  ;;  %v91_v10 = vpack.c.bf16 %v90_v6, %v90_v6  ;;  %v367_v12 = vld [vmem:[%s661_s5 + $0x8] sm:$0x1f]   ;;  %v237_v13 = vsel %vm235_vm2, %v236_v8, 0  ;;  %v213_v15 = vld [vmem:[#allocation7] sm:$0xff]  ;;  %s297_s16 = sshll.u32 %s518_s15, 4  ;;  %s298_s16 = int_to_ptr.vmem [resolvable:$true] %s297_s16 }
  0x5d   :  { %329 = vmatprep.subr.bf16.mxu0 %v515_v0  ;;  %337 = vmatprep.subr.bf16.mxu1 %v515_v0  ;;  %v239_v14 = vand.u32 %v367_v12, %v237_v13  ;;  %v214_v16 = vpack.c.bf16 %v213_v15, %v213_v15  ;;  %v317_v27 = vld [vmem:[%s662_s6] ss:$0 sm:$0xff]  ;;  %s478_s17 = scalar_lea.vmem %s298_s16, 128  ;;  %p483_p13 = scmp.lt.s32.totalorder %s298_s16, %s298_s16 }
  0x5e   :  { %p479_p12 = scmp.ne.s32.totalorder %s298_s16, %s478_s17  ;;  %p484_p0 = scmp.lt.s32.totalorder %s478_s17, %s478_s17 }
  0x60   :  { %330 = vmatpush3.bf16.msra.mxu0 %v364_v3  ;;  %338 = vmatpush3.bf16.msra.mxu1 %v365_v4  ;;  %p485_p1 = por %p484_p0, %p483_p13 }
  0x61   :  { %343 = vmatprep.subr.bf16.mxu0 %v515_v0 }
  0x62   :  { %p486_p2 = pnand %p485_p1, %p479_p12 }
  0x63   :  { %332 = vmatmul.mubr.msk.bf16.vlgmr.msra.gmra.mrb[0].mxu0 %vm114_vm3, %v97_v9  ;;  %340 = vmatmul.mubr.msk.bf16.vlgmr.msra.gmra.mrb[0].mxu1 %vm114_vm3, %v91_v10 }
  0x64   :  { %344 = vmatpush3.bf16.msra.mxu0 %v366_v11  ;;  %347 = vmatprep.mubr.msk.bf16.mxu0 %vm516_vm0, %v515_v0 }
  0x65   :  { %345 = vmatprep.subr.bf16.mxu0 %v515_v0 }
  0x68   :  { %346 = vmatpush3.bf16.msra.mxu0 %v239_v14 }
  0x6b   :  { %348 = vmatmul.mubr.msk.bf16.vlgmr.msra.gmra.mrb[4].mxu0 %vm230_vm4, %v214_v16 }
 0x136   :  { %v152_v17 = vpop.f32.mrb[0].mxu0  ;;  %v207_v19 = vpop.f32.mrb[0].mxu1 }
 0x137   :  { %v333_v18 = vpop.f32.mrb[1].mxu0  ;;  %v208_v20 = vadd.f32 %v207_v19, %v152_v17  ;;  %v341_v22 = vpop.f32.mrb[1].mxu1 }
 0x138   :  { %v155_v21 = vpop.f32.mrb[2].mxu0  ;;  %v210_v24 = vpop.f32.mrb[2].mxu1 }
 0x139   :  { %v334_v23 = vpop.f32.mrb[3].mxu0  ;;  %v342_v25 = vpop.f32.mrb[3].mxu1 }
 0x13e   :  { %v275_v26 = vpop.f32.mrb[4].mxu0 }
 0x13f   :  { %v281_v28 = vadd.f32 %v275_v26, %v208_v20  ;;  %v349_v29 = vpop.f32.mrb[5].mxu0 }
 0x140   :  { %v278_v30 = vpop.f32.mrb[6].mxu0 }
 0x141   :  { %v289_v31 = vadd.f32 %v317_v27, %v281_v28  ;;  %v350_v32 = vpop.f32.mrb[7].mxu0 }
 0x143   :  { %290 = vst [vmem:[#allocation11] sm:$0xff] %v289_v31 }
 0x144   :  { %489 = shalt.err (!%p486_p2)
}
 0x145   :  { %s490_s6 = scalar_lea.hbm %s663_s7, 128 }
 0x146   :  { %p491_p3 = scmp.ne.s32.totalorder %s663_s7, %s490_s6  ;;  %p494_p4 = scmp.lt.u32.totalorder %s490_s6, %s663_s7 }
 0x148   :  { %p496_p5 = pnand %p494_p4, %p491_p3 }
 0x14a   :  { %499 = shalt.err (!%p496_p5)
}
 0x14b   :  { %300 = dma.vmem_to_hbm [thread:$0]  %s298_s16, 128, %s663_s7, [#allocation4]  }
 0x14c   :  { %506 = dma.done.wait [#allocation4], 128  }
 0x14d   :  { %507 = vsyncadd [#allocation4], 4294967168 }
 0x14e   :  { %304 = vsyncpa [#allocation3], 1 }
 0x14f   :  { %305 = vsyncpa [#allocation6], 1 }
 0x150   :  { %306 = vsyncpa [#allocation9], 1 }
 0x151   :  { %307 = vsyncpa [#allocation4], 1 }

</bundles_post_ra>
